<compile_context>
chip_gen: v5e
topology: v5e:2x2
jax: 0.10.0
libtpu: 0.0.40
codegen_flags: <defaults>
</compile_context>

<pallas_src>
import jax
import jax.numpy as jnp
from jax.experimental import pallas as pl
from jax.experimental.pallas import tpu as pltpu


def _round_up(x, m):
    return ((x + m - 1) // m) * m


_TB_MAX = 512                      # row-tile cap (rows-major path)
_TS_MAX = 512                      # spatial lane-tile cap (channels-first path)
_VMEM_LIMIT = 64 * 1024 * 1024     # fits v7x physical; generous on v5e/v6e


# ---------------------------------------------------------------------------
# Kernel A (rows-major, 'linear' layout):
#   o = relu(x @ W1' + b1') @ W2 + b2      (BN already folded into W1'/b1')
# ---------------------------------------------------------------------------
def _mlp_rows_kernel(x_ref, w1_ref, b1_ref, w2_ref, b2_ref, o_ref):
    x = x_ref[...].astype(jnp.bfloat16)                       # per-tile cast (VPU)
    h = jnp.dot(x, w1_ref[...], preferred_element_type=jnp.float32)   # MXU bf16
    h = jnp.maximum(h + b1_ref[...], 0.0)                     # bias + ReLU (f32)
    # TODO(synk): training-mode dropout (pltpu.prng_seed + prng_random_bits mask);
    # inference-mode dropout is the identity, which is what is implemented here.
    o = jnp.dot(h.astype(jnp.bfloat16), w2_ref[...],
                preferred_element_type=jnp.float32)
    o_ref[...] = (o + b2_ref[...]).astype(o_ref.dtype)


def _fused_mlp_rows(x2d, w1, b1, w2, b2):
    """(rows, in_dim) -> (rows, out_dim). Fused fc1+bn+relu+fc2, weights resident."""
    rows, in_dim = x2d.shape
    hidden = w1.shape[1]
    out_dim = w2.shape[1]

    # Lane-dense output: pad W2 columns / b2 / out to a 128 multiple, slice after.
    out_pad = _round_up(out_dim, 128)
    if out_pad != out_dim:
        w2 = jnp.pad(w2, ((0, 0), (0, out_pad - out_dim)))
        b2 = jnp.pad(b2, (0, out_pad - out_dim))

    # Row tile: multiple of 8 (sublane), at least 2 grid steps when possible so
    # both v7x TensorCores get work. No jnp.pad of x: ragged last block is
    # handled by Pallas (OOB output rows are never written back).
    if rows <= 8:
        tb = rows
    else:
        tb = min(_TB_MAX, _round_up(pl.cdiv(rows, 2), 8))
    grid_m = pl.cdiv(rows, tb)

    w1_b = w1.astype(jnp.bfloat16)
    w2_b = w2.astype(jnp.bfloat16)
    b1_r = b1.reshape(1, hidden).astype(jnp.float32)
    b2_r = b2.reshape(1, out_pad).astype(jnp.float32)

    itemsize = x2d.dtype.itemsize
    # TODO(synk): K-tiled fallback (grid over in_dim chunks, f32 VMEM accumulator)
    # for in_dim*hidden too large to keep W1 resident (v7x has only 64 MiB VMEM).
    out = pl.pallas_call(
        _mlp_rows_kernel,
        out_shape=jax.ShapeDtypeStruct((rows, out_pad), x2d.dtype),
        grid=(grid_m,),
        in_specs=[
            pl.BlockSpec((tb, in_dim), lambda i: (i, 0)),       # x row tile
            pl.BlockSpec((in_dim, hidden), lambda i: (0, 0)),   # W1' (resident)
            pl.BlockSpec((1, hidden), lambda i: (0, 0)),        # b1' (BN folded)
            pl.BlockSpec((hidden, out_pad), lambda i: (0, 0)),  # W2  (resident)
            pl.BlockSpec((1, out_pad), lambda i: (0, 0)),       # b2
        ],
        out_specs=pl.BlockSpec((tb, out_pad), lambda i: (i, 0)),
        compiler_params=pltpu.CompilerParams(
            dimension_semantics=("parallel",),
            vmem_limit_bytes=_VMEM_LIMIT),
        cost_estimate=pl.CostEstimate(
            flops=2 * rows * (in_dim * hidden + hidden * out_pad),
            transcendentals=0,
            bytes_accessed=(rows * in_dim * itemsize
                            + rows * out_pad * itemsize
                            + 2 * (in_dim * hidden + hidden * out_pad))),
    )(x2d, w1_b, b1_r, w2_b, b2_r)

    return out[:, :out_dim] if out_pad != out_dim else out


# ---------------------------------------------------------------------------
# Kernel B (channels-first, 'convolutional' layout, no activation transposes):
#   x tile is (C, ts) -> h = W1'^T @ x, relu, o = W2^T @ h  -> (out_dim, ts)
#   Lane dim = spatial axis (dense); contraction dim = sublanes.
# ---------------------------------------------------------------------------
def _mlp_chan_kernel(x_ref, w1t_ref, b1_ref, w2t_ref, b2_ref, o_ref):
    x = x_ref[...].astype(jnp.bfloat16)                        # (C, ts)
    h = jnp.dot(w1t_ref[...], x, preferred_element_type=jnp.float32)   # (H, ts)
    h = jnp.maximum(h + b1_ref[...], 0.0)                      # (H,1) lane bcast
    o = jnp.dot(w2t_ref[...], h.astype(jnp.bfloat16),
                preferred_element_type=jnp.float32)            # (O, ts)
    o_ref[...] = (o + b2_ref[...]).astype(o_ref.dtype)


def _fused_mlp_channels_first(x3d, w1, b1, w2, b2):
    """(B, C, S) -> (B, out_dim, S). Fused 1x1x1-conv MLP, weights resident."""
    B, C, S = x3d.shape
    hidden = w1.shape[1]
    out_dim = w2.shape[1]

    ts = S if S <= _TS_MAX else _TS_MAX       # full dim, or a 128-multiple tile
    grid_s = pl.cdiv(S, ts)

    w1t = w1.T.astype(jnp.bfloat16)           # (hidden, C)   -- tiny, once
    w2t = w2.T.astype(jnp.bfloat16)           # (out_dim, hidden)
    b1_c = b1.reshape(hidden, 1).astype(jnp.float32)
    b2_c = b2.reshape(out_dim, 1).astype(jnp.float32)

    itemsize = x3d.dtype.itemsize
    out = pl.pallas_call(
        _mlp_chan_kernel,
        out_shape=jax.ShapeDtypeStruct((B, out_dim, S), x3d.dtype),
        grid=(B, grid_s),
        in_specs=[
            pl.BlockSpec((None, C, ts), lambda b, s: (b, 0, s)),   # x spatial tile
            pl.BlockSpec((hidden, C), lambda b, s: (0, 0)),        # W1'^T resident
            pl.BlockSpec((hidden, 1), lambda b, s: (0, 0)),        # b1' column
            pl.BlockSpec((out_dim, hidden), lambda b, s: (0, 0)),  # W2^T resident
            pl.BlockSpec((out_dim, 1), lambda b, s: (0, 0)),       # b2 column
        ],
        out_specs=pl.BlockSpec((None, out_dim, ts), lambda b, s: (b, 0, s)),
        compiler_params=pltpu.CompilerParams(
            dimension_semantics=("parallel", "parallel"),
            vmem_limit_bytes=_VMEM_LIMIT),
        cost_estimate=pl.CostEstimate(
            flops=2 * B * S * (C * hidden + hidden * out_dim),
            transcendentals=0,
            bytes_accessed=(B * C * S * itemsize
                            + B * out_dim * S * itemsize
                            + 2 * (C * hidden + hidden * out_dim))),
    )(x3d, w1t, b1_c, w2t, b2_c)
    return out


# ---------------------------------------------------------------------------
# Module wrapper (JAX / Pallas port of the PyTorch ClassificationLayer)
# ---------------------------------------------------------------------------
class ClassificationLayer:
    def __init__(self, type, in_dim, out_dim, enable_batchnorm=False,
                 dropout=0.5, *, key, dtype=jnp.float32):
        for t in (type[0], type[1]):
            if t not in ('linear', 'convolutional'):
                raise NotImplementedError(
                    'You insert ' + str(type) + ' as ClassificationLayer type, '
                    'but only linear and convolutional type are implemented.')
        self.type = (type[0], type[1])
        self.in_dim = in_dim
        self.out_dim = out_dim
        self.hidden = in_dim // 2
        self.enable_batchnorm = enable_batchnorm
        self.dropout = dropout   # inference: identity

        k1, k2, k3, k4, k5, k6 = jax.random.split(key, 6)
        bound1 = 1.0 / (in_dim ** 0.5)
        bound2 = 1.0 / (self.hidden ** 0.5)
        # Weights stored input-major so the row-major kernel does plain x @ W.
        self.w1 = jax.random.uniform(k1, (in_dim, self.hidden), dtype,
                                     minval=-bound1, maxval=bound1)
        self.b1 = jax.random.uniform(k2, (self.hidden,), dtype,
                                     minval=-bound1, maxval=bound1)
        self.w2 = jax.random.uniform(k3, (self.hidden, out_dim), dtype,
                                     minval=-bound2, maxval=bound2)
        self.b2 = jax.random.uniform(k4, (out_dim,), dtype,
                                     minval=-bound2, maxval=bound2)

        if enable_batchnorm:
            # Inference-mode BatchNorm1d folded into scale/shift.
            eps = 1e-5
            gamma = 1.0 + 0.1 * jax.random.normal(k5, (self.hidden,), dtype)
            beta = 0.1 * jax.random.normal(k6, (self.hidden,), dtype)
            run_mean = 0.05 * jax.random.normal(k5, (self.hidden,), dtype)
            run_var = 1.0 + 0.1 * jax.random.uniform(k6, (self.hidden,), dtype)
            self.scale = gamma / jnp.sqrt(run_var + eps)
            self.shift = beta - run_mean * self.scale
        else:
            self.scale = jnp.ones((self.hidden,), dtype)
            self.shift = jnp.zeros((self.hidden,), dtype)

        # Fold BN scale/shift (and b1) into fc1 once (inference):
        #   W1' = W1 * scale ,  b1' = b1 * scale + shift
        self.w1f = self.w1 * self.scale[None, :]
        self.b1f = self.b1 * self.scale + self.shift

    # ---- forward (fused Pallas kernels) ------------------------------------
    def __call__(self, x):
        if self.type[0] == 'convolutional':
            # (B, C, D, H, W) -> contiguous view (B, C, S); NO transposes.
            B, C = x.shape[0], x.shape[1]
            spatial = x.shape[2:]
            x3d = x.reshape(B, C, -1)
            o = _fused_mlp_channels_first(x3d, self.w1f, self.b1f,
                                          self.w2, self.b2)
            return o.reshape((B, self.out_dim) + tuple(spatial))
        lead = x.shape[:-1]
        o2d = _fused_mlp_rows(x.reshape(-1, x.shape[-1]),
                              self.w1f, self.b1f, self.w2, self.b2)
        return o2d.reshape(tuple(lead) + (self.out_dim,))

    # ---- pure-JAX reference of the same (inference) forward ----------------
    def _ref2d(self, x2d):
        h = x2d @ self.w1 + self.b1
        h = h * self.scale + self.shift           # unfolded BN (checks folding)
        h = jnp.maximum(h, 0.0)
        return h @ self.w2 + self.b2

    def reference(self, x):
        if self.type[0] == 'convolutional':
            B, C = x.shape[0], x.shape[1]
            spatial = x.shape[2:]
            x2d = jnp.moveaxis(x, 1, -1).reshape(-1, C)
            o = self._ref2d(x2d).reshape((B,) + tuple(spatial) + (self.out_dim,))
            return jnp.moveaxis(o, -1, 1)
        lead = x.shape[:-1]
        o2d = self._ref2d(x.reshape(-1, x.shape[-1]))
        return o2d.reshape(tuple(lead) + (self.out_dim,))


# ---------------------------------------------------------------------------
if __name__ == "__main__":
    key = jax.random.PRNGKey(0)
    k_lin, k_lin2, k_conv, k_x = jax.random.split(key, 4)

    # ---- ('linear','linear') with BatchNorm, small batch -------------------
    in_dim, out_dim, batch = 32, 10, 8
    layer = ClassificationLayer(('linear', 'linear'), in_dim, out_dim,
                                enable_batchnorm=True, dropout=0.5, key=k_lin)
    x = jax.random.normal(k_x, (batch, in_dim), dtype=jnp.float32)
    y = jax.block_until_ready(layer(x))
    y_ref = jax.block_until_ready(layer.reference(x))
    assert y.shape == (batch, out_dim) and y.dtype == x.dtype
    assert bool(jnp.allclose(y, y_ref, rtol=5e-2, atol=5e-2)), "linear path mismatch"

    # ---- ('linear','linear'): ragged rows -> 2 grid steps + padded lanes ---
    layer2 = ClassificationLayer(('linear', 'linear'), 64, out_dim,
                                 enable_batchnorm=True, dropout=0.5, key=k_lin2)
    x2 = jax.random.normal(k_x, (200, 64), dtype=jnp.float32)
    y2 = jax.block_until_ready(layer2(x2))
    y2_ref = jax.block_until_ready(layer2.reference(x2))
    assert y2.shape == (200, out_dim)
    assert bool(jnp.allclose(y2, y2_ref, rtol=5e-2, atol=5e-2)), "ragged path mismatch"

    # ---- ('convolutional','convolutional'): 1x1x1 Conv3d == per-voxel MLP --
    layer_c = ClassificationLayer(('convolutional', 'convolutional'), in_dim,
                                  out_dim, enable_batchnorm=False,
                                  dropout=0.5, key=k_conv)
    xc = jax.random.normal(k_x, (2, in_dim, 4, 4, 4), dtype=jnp.float32)
    yc = jax.block_until_ready(layer_c(xc))
    yc_ref = jax.block_until_ready(layer_c.reference(xc))
    assert yc.shape == (2, out_dim, 4, 4, 4)
    assert bool(jnp.allclose(yc, yc_ref, rtol=5e-2, atol=5e-2)), "conv path mismatch"

    print("KERNEL_OK")
</pallas_src>

<mosaic_0001>
module attributes {stable_mosaic.version = 11 : i64} {
  func.func @_mlp_rows_kernel(%arg0: i32, %arg1: memref<8x32xf32, #tpu.memory_space<vmem>>, %arg2: memref<32x16xbf16, #tpu.memory_space<vmem>>, %arg3: memref<1x16xf32, #tpu.memory_space<vmem>>, %arg4: memref<16x128xbf16, #tpu.memory_space<vmem>>, %arg5: memref<1x128xf32, #tpu.memory_space<vmem>>, %arg6: memref<8x128xf32, #tpu.memory_space<vmem>>) attributes {dimension_semantics = [#tpu.dimension_semantics<parallel>], iteration_bounds = array<i64: 1>, scalar_prefetch = 0 : i64, scratch_operands = 0 : i64, tpu.core_type = #tpu.core_type<tc>, window_params = [{transform_indices = @transform_0, window_bounds = array<i64: 8, 32>}, {pipeline_mode = #tpu.pipeline_mode<synchronous>, transform_indices = @transform_1, window_bounds = array<i64: 32, 16>}, {pipeline_mode = #tpu.pipeline_mode<synchronous>, transform_indices = @transform_2, window_bounds = array<i64: 1, 16>}, {pipeline_mode = #tpu.pipeline_mode<synchronous>, transform_indices = @transform_3, window_bounds = array<i64: 16, 128>}, {pipeline_mode = #tpu.pipeline_mode<synchronous>, transform_indices = @transform_4, window_bounds = array<i64: 1, 128>}, {transform_indices = @transform_5, window_bounds = array<i64: 8, 128>}]} {
    %c0 = arith.constant 0 : index
    %c0_0 = arith.constant 0 : index
    %0 = vector.load %arg1[%c0, %c0_0] : memref<8x32xf32, #tpu.memory_space<vmem>>, vector<8x32xf32>
    %1 = arith.truncf %0 : vector<8x32xf32> to vector<8x32xbf16>
    %c0_1 = arith.constant 0 : index
    %c0_2 = arith.constant 0 : index
    %2 = vector.load %arg2[%c0_1, %c0_2] : memref<32x16xbf16, #tpu.memory_space<vmem>>, vector<32x16xbf16>
    %cst = arith.constant dense<0.000000e+00> : vector<8x16xf32>
    %3 = tpu.matmul %1, %2, %cst {dimension_numbers = #tpu.dot_dimension_numbers<[1], [0], [0], [1], [0, 0, 1, 1], [], []>} : vector<8x32xbf16>, vector<32x16xbf16>, vector<8x16xf32> -> vector<8x16xf32>
    %c0_3 = arith.constant 0 : index
    %c0_4 = arith.constant 0 : index
    %4 = vector.load %arg3[%c0_3, %c0_4] : memref<1x16xf32, #tpu.memory_space<vmem>>, vector<1x16xf32>
    %5 = vector.broadcast %4 : vector<1x16xf32> to vector<8x16xf32>
    %6 = arith.addf %3, %5 : vector<8x16xf32>
    %cst_5 = arith.constant 0.000000e+00 : f32
    %7 = vector.broadcast %cst_5 : f32 to vector<8x16xf32>
    %8 = arith.maximumf %6, %7 : vector<8x16xf32>
    %9 = arith.truncf %8 : vector<8x16xf32> to vector<8x16xbf16>
    %c0_6 = arith.constant 0 : index
    %c0_7 = arith.constant 0 : index
    %10 = vector.load %arg4[%c0_6, %c0_7] : memref<16x128xbf16, #tpu.memory_space<vmem>>, vector<16x128xbf16>
    %cst_8 = arith.constant dense<0.000000e+00> : vector<8x128xf32>
    %11 = tpu.matmul %9, %10, %cst_8 {dimension_numbers = #tpu.dot_dimension_numbers<[1], [0], [0], [1], [0, 0, 1, 1], [], []>} : vector<8x16xbf16>, vector<16x128xbf16>, vector<8x128xf32> -> vector<8x128xf32>
    %c0_9 = arith.constant 0 : index
    %c0_10 = arith.constant 0 : index
    %12 = vector.load %arg5[%c0_9, %c0_10] : memref<1x128xf32, #tpu.memory_space<vmem>>, vector<1x128xf32>
    %13 = vector.broadcast %12 : vector<1x128xf32> to vector<8x128xf32>
    %14 = arith.addf %11, %13 : vector<8x128xf32>
    %c0_11 = arith.constant 0 : index
    %c0_12 = arith.constant 0 : index
    %15 = vector.load %arg6[%c0_11, %c0_12] : memref<8x128xf32, #tpu.memory_space<vmem>>, vector<8x128xf32>
    tpu.vector_store %arg6[%c0_11, %c0_12], %14 {strides = array<i32>} : memref<8x128xf32, #tpu.memory_space<vmem>>, vector<8x128xf32>,
    return
  }
  func.func @transform_0(%arg0: i32) -> (i32, i32) {
    %c0_i32 = arith.constant 0 : i32
    %c0_i32_0 = arith.constant 0 : i32
    return %arg0, %c0_i32 : i32, i32
  }
  func.func @transform_1(%arg0: i32) -> (i32, i32) {
    %c0_i32 = arith.constant 0 : i32
    %c0_i32_0 = arith.constant 0 : i32
    %c0_i32_1 = arith.constant 0 : i32
    return %c0_i32, %c0_i32_0 : i32, i32
  }
  func.func @transform_2(%arg0: i32) -> (i32, i32) {
    %c0_i32 = arith.constant 0 : i32
    %c0_i32_0 = arith.constant 0 : i32
    %c0_i32_1 = arith.constant 0 : i32
    return %c0_i32, %c0_i32_0 : i32, i32
  }
  func.func @transform_3(%arg0: i32) -> (i32, i32) {
    %c0_i32 = arith.constant 0 : i32
    %c0_i32_0 = arith.constant 0 : i32
    %c0_i32_1 = arith.constant 0 : i32
    return %c0_i32, %c0_i32_0 : i32, i32
  }
  func.func @transform_4(%arg0: i32) -> (i32, i32) {
    %c0_i32 = arith.constant 0 : i32
    %c0_i32_0 = arith.constant 0 : i32
    %c0_i32_1 = arith.constant 0 : i32
    return %c0_i32, %c0_i32_0 : i32, i32
  }
  func.func @transform_5(%arg0: i32) -> (i32, i32) {
    %c0_i32 = arith.constant 0 : i32
    %c0_i32_0 = arith.constant 0 : i32
    return %arg0, %c0_i32 : i32, i32
  }
}

</mosaic_0001>

<bundles_post_ra>
// kernel: tpu_custom_call.1
= control target key start
LH: loop header
LB: loop body
LE: loop exit
PB: predicated region body
PF: predicated region fallthrough
CT: control target
= control target key end

     0   :  { %s207_s0 = inlined_call_operand.vmem [shape: f32[8,32], index: 0, kind: input, shape index: {}]   ;;  %s208_s1 = inlined_call_operand.vmem [shape: bf16[32,16], index: 1, kind: input, shape index: {}]   ;;  %s209_s2 = inlined_call_operand.vmem [shape: f32[1,16], index: 2, kind: input, shape index: {}]   ;;  %s210_s3 = inlined_call_operand.vmem [shape: bf16[16,128], index: 3, kind: input, shape index: {}]   ;;  %s211_s4 = inlined_call_operand.vmem [shape: f32[1,128], index: 4, kind: input, shape index: {}]   ;;  %s212_s5 = inlined_call_operand.hbm [shape: f32[8,128], index: 5, kind: output, shape index: {}]  }
   0x1   :  { %v124_v0 = vld [vmem:[%s208_s1 + $0x8] sm:$0xff]  ;;  %v123_v1 = vld [vmem:[%s208_s1] sm:$0xff] }
   0x2   :  { %54 = vmatpush.bf16.msra.mxu0 %v124_v0  ;;  %v22_v2 = vld [vmem:[%s207_s0] sm:$0xff] }
   0x3   :  { %10 = vsyncpa [#allocation3], 0  ;;  %v23_v3 = vpack.c.bf16 %v22_v2, %v22_v2  ;;  %vm44_vm0 = vcmask 261120   ;;  %v125_v4 = vld [vmem:[%s210_s3] sm:$0xff]  ;;  %vm75_vm1 = vcmask 130048   ;;  %s155_s28 = smov [#allocation2]  }
   0x4   :  { %86 = vmatpush.bf16.msra.mxu1 %v125_v4  ;;  %v127_v5 = vld [vmem:[%s209_s2] ss:$0 sm:$0xff]  ;;  %s98_s29 = sshll.u32 %s155_s28, 4  ;;  %s100_s6 = sshll.u32 %s212_s5, 4  ;;  %s99_s29 = int_to_ptr.vmem [resolvable:$true] %s98_s29  ;;  %s101_s6 = int_to_ptr.hbm [resolvable:$true] %s100_s6 }
   0x5   :  { %v128_v11 = vld [vmem:[%s211_s4] ss:$0 sm:$0xff] }
   0x6   :  { %55 = vmatpush.bf16.msra.mxu0 %v123_v1 }
   0x9   :  { %117 = vmatmul.msk.bf16.vlgmr.msra.gmra.mxu0 %vm44_vm0, %v23_v3 }
  0x86   :  { %v57_v6 = vpop.f32.mrf.mxu0 }
  0x87   :  { %v58_v7 = vadd.f32 %v127_v5, %v57_v6 }
  0x89   :  { %v61_v8 = vmax.f32 %v58_v7, 0.0 }
  0x8b   :  { %v62_v9 = vpack.c.bf16 %v61_v8, %v61_v8 }
  0x8d   :  { %122 = vmatmul.msk.bf16.vlgmr.msra.gmra.mxu1 %vm75_vm1, %v62_v9 }
  0x8e   :  { %v59_v10 = vpop.f32.mrf.mxu0 }
 0x10a   :  { %v88_v12 = vpop.f32.mrf.mxu1 }
 0x10b   :  { %v89_v13 = vadd.f32 %v128_v11, %v88_v12 }
 0x10d   :  { %92 = vst [vmem:[#allocation2] sm:$0xff] %v89_v13 }
 0x10e   :  { %103 = dma.vmem_to_hbm [thread:$0]  %s99_s29, 128, %s101_s6, [#allocation3]  }
 0x112   :  { %v90_v14 = vpop.f32.mrf.mxu1 }
 0x113   :  { %153 = dma.done.wait [#allocation3], 128  }
 0x114   :  { %154 = vsyncadd [#allocation3], 4294967168 }
 0x115   :  { %108 = vsyncpa [#allocation3], 1 }

</bundles_post_ra>
